<compile_context>
chip_gen: v5e
topology: v5e:2x2
jax: 0.10.0
libtpu: 0.0.40
codegen_flags: <defaults>
</compile_context>

<pallas_src>
import jax
import jax.numpy as jnp
from jax.experimental import pallas as pl
from jax.experimental.pallas import tpu as pltpu

N_INPUTS = 14
N_OUTPUTS = 1
SUBLANE = 8
TILE_B = 2048  # ~114 KB of real x bytes per tile; amortizes per-step grid overhead.


def _round_up(x, m):
    return (x + m - 1) // m * m


def mlp_kernel(x_ref, w1_ref, b1_ref, w2_ref, b2_ref, w3t_ref, b3_ref, o_ref):
    """Fused MLP forward for one batch tile (weights stay VMEM-resident).

    x_ref:  (TILE_B, 14)   w1: (14, 32)  b1: (1, 32)
                           w2: (32, 32)  b2: (1, 32)
                           w3t:(1, 32)   b3: (1, 1)
    o_ref:  (TILE_B, 1)
    """
    x = x_ref[...]
    # Layer 1: Linear(14 -> 32) + ReLU  (dropout = eval-mode identity)
    h = jnp.dot(x, w1_ref[...], preferred_element_type=jnp.float32) + b1_ref[...]
    h = jnp.maximum(h, 0.0)
    # Layer 2: Linear(32 -> 32) + ReLU
    h = jnp.dot(h, w2_ref[...], preferred_element_type=jnp.float32) + b2_ref[...]
    h = jnp.maximum(h, 0.0)
    # Output layer: Linear(32 -> 1) as multiply + lane reduction; Identity activation.
    o_ref[...] = jnp.sum(h * w3t_ref[...], axis=-1, keepdims=True) + b3_ref[...]


@jax.jit
def net_forward(x, params):
    """x: (B, 14) float32 -> (B, 1) float32."""
    (w1, b1), (w2, b2), (w3, b3) = params
    B = x.shape[0]

    tile_b = min(TILE_B, _round_up(max(B, SUBLANE), SUBLANE))
    Bp = _round_up(max(B, SUBLANE), tile_b)
    grid = (Bp // tile_b,)

    # Pad only along batch so the grid divides evenly; no lane padding of x.
    x_p = jnp.pad(x.astype(jnp.float32), ((0, Bp - B), (0, 0)))

    b1_r = b1.reshape(1, -1).astype(jnp.float32)      # (1, 32)
    b2_r = b2.reshape(1, -1).astype(jnp.float32)      # (1, 32)
    w3_t = w3.reshape(1, -1).astype(jnp.float32)      # (32, 1) -> (1, 32)
    b3_r = b3.reshape(1, 1).astype(jnp.float32)       # (1, 1)
    w1_f = w1.astype(jnp.float32)
    w2_f = w2.astype(jnp.float32)

    def resident(a):
        # Full-array block, constant index map -> DMA'd once, stays resident.
        return pl.BlockSpec(a.shape, lambda i: (0, 0))

    out_p = pl.pallas_call(
        mlp_kernel,
        out_shape=jax.ShapeDtypeStruct((Bp, N_OUTPUTS), jnp.float32),
        grid=grid,
        in_specs=[
            pl.BlockSpec((tile_b, N_INPUTS), lambda i: (i, 0)),
            resident(w1_f), resident(b1_r),
            resident(w2_f), resident(b2_r),
            resident(w3_t), resident(b3_r),
        ],
        out_specs=pl.BlockSpec((tile_b, N_OUTPUTS), lambda i: (i, 0)),
        compiler_params=pltpu.CompilerParams(
            dimension_semantics=("parallel",)),
    )(x_p, w1_f, b1_r, w2_f, b2_r, w3_t, b3_r)

    return out_p[:B]


def init_params(key, n_units):
    """Deterministic init matching torch.nn.Linear shapes (stored as (in, out))."""
    dims = [N_INPUTS] + list(n_units) + [N_OUTPUTS]
    params = []
    for i in range(len(dims) - 1):
        fan_in, fan_out = dims[i], dims[i + 1]
        key, kw, kb = jax.random.split(key, 3)
        bound = 1.0 / jnp.sqrt(fan_in)
        w = jax.random.uniform(kw, (fan_in, fan_out), jnp.float32, -bound, bound)
        b = jax.random.uniform(kb, (fan_out,), jnp.float32, -bound, bound)
        params.append((w, b))
    return tuple(params)


def reference_forward(x, params):
    (w1, b1), (w2, b2), (w3, b3) = params
    h = jnp.maximum(x @ w1 + b1, 0.0)
    h = jnp.maximum(h @ w2 + b2, 0.0)
    return h @ w3 + b3   # Identity output activation


if __name__ == "__main__":
    key = jax.random.PRNGKey(0)
    kx, kx2, kp = jax.random.split(key, 3)

    n_units = [32, 32]                       # n_layers = 2
    params = init_params(kp, n_units)

    # Small canonical case (batch=4).
    B = 4
    x = jax.random.normal(kx, (B, N_INPUTS), jnp.float32)
    out = jax.block_until_ready(net_forward(x, params))
    ref = reference_forward(x, params)
    assert out.shape == (B, N_OUTPUTS), out.shape
    assert jnp.allclose(out, ref, atol=1e-5, rtol=1e-5), (out, ref)

    # Larger batch exercising the tiled grid (grid > 1) and batch padding.
    B2 = 2600
    x2 = jax.random.normal(kx2, (B2, N_INPUTS), jnp.float32)
    out2 = jax.block_until_ready(net_forward(x2, params))
    ref2 = reference_forward(x2, params)
    assert out2.shape == (B2, N_OUTPUTS), out2.shape
    assert jnp.allclose(out2, ref2, atol=1e-5, rtol=1e-5)

    print("KERNEL_OK")
</pallas_src>

<mosaic_0001>
module attributes {stable_mosaic.version = 11 : i64} {
  func.func @mlp_kernel(%arg0: i32, %arg1: memref<8x14xf32, #tpu.memory_space<vmem>>, %arg2: memref<14x32xf32, #tpu.memory_space<vmem>>, %arg3: memref<1x32xf32, #tpu.memory_space<vmem>>, %arg4: memref<32x32xf32, #tpu.memory_space<vmem>>, %arg5: memref<1x32xf32, #tpu.memory_space<vmem>>, %arg6: memref<1x32xf32, #tpu.memory_space<vmem>>, %arg7: memref<1x1xf32, #tpu.memory_space<vmem>>, %arg8: memref<8x1xf32, #tpu.memory_space<vmem>>) attributes {dimension_semantics = [#tpu.dimension_semantics<parallel>], iteration_bounds = array<i64: 1>, scalar_prefetch = 0 : i64, scratch_operands = 0 : i64, tpu.core_type = #tpu.core_type<tc>, window_params = [{transform_indices = @transform_0, window_bounds = array<i64: 8, 14>}, {pipeline_mode = #tpu.pipeline_mode<synchronous>, transform_indices = @transform_1, window_bounds = array<i64: 14, 32>}, {pipeline_mode = #tpu.pipeline_mode<synchronous>, transform_indices = @transform_2, window_bounds = array<i64: 1, 32>}, {pipeline_mode = #tpu.pipeline_mode<synchronous>, transform_indices = @transform_3, window_bounds = array<i64: 32, 32>}, {pipeline_mode = #tpu.pipeline_mode<synchronous>, transform_indices = @transform_4, window_bounds = array<i64: 1, 32>}, {pipeline_mode = #tpu.pipeline_mode<synchronous>, transform_indices = @transform_5, window_bounds = array<i64: 1, 32>}, {pipeline_mode = #tpu.pipeline_mode<synchronous>, transform_indices = @transform_6, window_bounds = array<i64: 1, 1>}, {transform_indices = @transform_7, window_bounds = array<i64: 8, 1>}]} {
    %c0 = arith.constant 0 : index
    %c0_0 = arith.constant 0 : index
    %0 = vector.load %arg1[%c0, %c0_0] : memref<8x14xf32, #tpu.memory_space<vmem>>, vector<8x14xf32>
    %c0_1 = arith.constant 0 : index
    %c0_2 = arith.constant 0 : index
    %1 = vector.load %arg2[%c0_1, %c0_2] : memref<14x32xf32, #tpu.memory_space<vmem>>, vector<14x32xf32>
    %cst = arith.constant dense<0.000000e+00> : vector<8x32xf32>
    %2 = tpu.matmul %0, %1, %cst {dimension_numbers = #tpu.dot_dimension_numbers<[1], [0], [0], [1], [0, 0, 1, 1], [], []>} : vector<8x14xf32>, vector<14x32xf32>, vector<8x32xf32> -> vector<8x32xf32>
    %c0_3 = arith.constant 0 : index
    %c0_4 = arith.constant 0 : index
    %3 = vector.load %arg3[%c0_3, %c0_4] : memref<1x32xf32, #tpu.memory_space<vmem>>, vector<1x32xf32>
    %4 = vector.broadcast %3 : vector<1x32xf32> to vector<8x32xf32>
    %5 = arith.addf %2, %4 : vector<8x32xf32>
    %cst_5 = arith.constant 0.000000e+00 : f32
    %6 = vector.broadcast %cst_5 : f32 to vector<8x32xf32>
    %7 = arith.maximumf %5, %6 : vector<8x32xf32>
    %c0_6 = arith.constant 0 : index
    %c0_7 = arith.constant 0 : index
    %8 = vector.load %arg4[%c0_6, %c0_7] : memref<32x32xf32, #tpu.memory_space<vmem>>, vector<32x32xf32>
    %cst_8 = arith.constant dense<0.000000e+00> : vector<8x32xf32>
    %9 = tpu.matmul %7, %8, %cst_8 {dimension_numbers = #tpu.dot_dimension_numbers<[1], [0], [0], [1], [0, 0, 1, 1], [], []>} : vector<8x32xf32>, vector<32x32xf32>, vector<8x32xf32> -> vector<8x32xf32>
    %c0_9 = arith.constant 0 : index
    %c0_10 = arith.constant 0 : index
    %10 = vector.load %arg5[%c0_9, %c0_10] : memref<1x32xf32, #tpu.memory_space<vmem>>, vector<1x32xf32>
    %11 = vector.broadcast %10 : vector<1x32xf32> to vector<8x32xf32>
    %12 = arith.addf %9, %11 : vector<8x32xf32>
    %cst_11 = arith.constant 0.000000e+00 : f32
    %13 = vector.broadcast %cst_11 : f32 to vector<8x32xf32>
    %14 = arith.maximumf %12, %13 : vector<8x32xf32>
    %c0_12 = arith.constant 0 : index
    %c0_13 = arith.constant 0 : index
    %15 = vector.load %arg6[%c0_12, %c0_13] : memref<1x32xf32, #tpu.memory_space<vmem>>, vector<1x32xf32>
    %16 = vector.broadcast %15 : vector<1x32xf32> to vector<8x32xf32>
    %17 = arith.mulf %14, %16 : vector<8x32xf32>
    %cst_14 = arith.constant dense<0.000000e+00> : vector<8xf32>
    %18 = vector.multi_reduction <add>, %17, %cst_14 [1] : vector<8x32xf32> to vector<8xf32>
    %19 = vector.shape_cast %18 : vector<8xf32> to vector<8x1xf32>
    %c0_15 = arith.constant 0 : index
    %c0_16 = arith.constant 0 : index
    %20 = vector.load %arg7[%c0_15, %c0_16] : memref<1x1xf32, #tpu.memory_space<vmem>>, vector<1x1xf32>
    %21 = vector.broadcast %20 : vector<1x1xf32> to vector<8x1xf32>
    %22 = arith.addf %19, %21 : vector<8x1xf32>
    %c0_17 = arith.constant 0 : index
    %c0_18 = arith.constant 0 : index
    %23 = vector.load %arg8[%c0_17, %c0_18] : memref<8x1xf32, #tpu.memory_space<vmem>>, vector<8x1xf32>
    tpu.vector_store %arg8[%c0_17, %c0_18], %22 {strides = array<i32>} : memref<8x1xf32, #tpu.memory_space<vmem>>, vector<8x1xf32>,
    return
  }
  func.func @transform_0(%arg0: i32) -> (i32, i32) {
    %c0_i32 = arith.constant 0 : i32
    %c0_i32_0 = arith.constant 0 : i32
    return %arg0, %c0_i32 : i32, i32
  }
  func.func @transform_1(%arg0: i32) -> (i32, i32) {
    %c0_i32 = arith.constant 0 : i32
    %c0_i32_0 = arith.constant 0 : i32
    %c0_i32_1 = arith.constant 0 : i32
    return %c0_i32, %c0_i32_0 : i32, i32
  }
  func.func @transform_2(%arg0: i32) -> (i32, i32) {
    %c0_i32 = arith.constant 0 : i32
    %c0_i32_0 = arith.constant 0 : i32
    %c0_i32_1 = arith.constant 0 : i32
    return %c0_i32, %c0_i32_0 : i32, i32
  }
  func.func @transform_3(%arg0: i32) -> (i32, i32) {
    %c0_i32 = arith.constant 0 : i32
    %c0_i32_0 = arith.constant 0 : i32
    %c0_i32_1 = arith.constant 0 : i32
    return %c0_i32, %c0_i32_0 : i32, i32
  }
  func.func @transform_4(%arg0: i32) -> (i32, i32) {
    %c0_i32 = arith.constant 0 : i32
    %c0_i32_0 = arith.constant 0 : i32
    %c0_i32_1 = arith.constant 0 : i32
    return %c0_i32, %c0_i32_0 : i32, i32
  }
  func.func @transform_5(%arg0: i32) -> (i32, i32) {
    %c0_i32 = arith.constant 0 : i32
    %c0_i32_0 = arith.constant 0 : i32
    %c0_i32_1 = arith.constant 0 : i32
    return %c0_i32, %c0_i32_0 : i32, i32
  }
  func.func @transform_6(%arg0: i32) -> (i32, i32) {
    %c0_i32 = arith.constant 0 : i32
    %c0_i32_0 = arith.constant 0 : i32
    %c0_i32_1 = arith.constant 0 : i32
    return %c0_i32, %c0_i32_0 : i32, i32
  }
  func.func @transform_7(%arg0: i32) -> (i32, i32) {
    %c0_i32 = arith.constant 0 : i32
    %c0_i32_0 = arith.constant 0 : i32
    return %arg0, %c0_i32 : i32, i32
  }
}

</mosaic_0001>

<bundles_post_ra>
// kernel: net_forward.1
= control target key start
LH: loop header
LB: loop body
LE: loop exit
PB: predicated region body
PF: predicated region fallthrough
CT: control target
= control target key end

     0   :  { %s281_s0 = inlined_call_operand.vmem [shape: f32[8,14], index: 0, kind: input, shape index: {}]   ;;  %s282_s1 = inlined_call_operand.hbm [shape: f32[14,32], index: 1, kind: input, shape index: {}]   ;;  %s283_s2 = inlined_call_operand.vmem [shape: f32[1,32], index: 2, kind: input, shape index: {}]   ;;  %s284_s3 = inlined_call_operand.hbm [shape: f32[32,32], index: 3, kind: input, shape index: {}]   ;;  %s285_s4 = inlined_call_operand.vmem [shape: f32[1,32], index: 4, kind: input, shape index: {}]   ;;  %s286_s5 = inlined_call_operand.vmem [shape: f32[1,32], index: 5, kind: input, shape index: {}]   ;;  %s287_s6 = inlined_call_operand.<no memory space> [shape: f32[1,1], index: 6, kind: input, shape index: {}]   ;;  %s288_s7 = inlined_call_operand.vmem [shape: f32[8,1], index: 7, kind: output, shape index: {}]  }
   0x1   :  { %v12_v0 = vstv %s287_s6 }
   0x2   :  { %13 = vst [vmem:[#allocation2] sm:$0x1] %v12_v0 }
   0x3   :  { %14 = vsyncpa [#allocation4], 0  ;;  %s22_s28 = sshll.u32 %s282_s1, 4  ;;  %s23_s28 = int_to_ptr.hbm [resolvable:$true] %s22_s28 }
   0x4   :  { %15 = vsyncpa [#allocation6], 0  ;;  %s213_s29 = smov [#allocation3]   ;;  %s37_s10 = sshll.u32 %s284_s3, 4  ;;  %s38_s10 = int_to_ptr.hbm [resolvable:$true] %s37_s10 }
   0x5   :  { %s24_s30 = sshll.u32 %s213_s29, 4  ;;  %s214_s11 = smov 128   ;;  %s25_s30 = int_to_ptr.vmem [resolvable:$true] %s24_s30 }
   0x6   :  { %s215_s12 = smov 8   ;;  %s216_s6 = smov [#allocation5]  }
   0x7   :  { %30 = dma.hbm_to_vmem [thread:$0]  %s23_s28, 256, %s25_s30, [#allocation4], %s214_s11, %s214_s11, %s215_s12  }
   0x8   :  { %s39_s13 = sshll.u32 %s216_s6, 4  ;;  %s40_s13 = int_to_ptr.vmem [resolvable:$true] %s39_s13 }
   0x9   :  { %45 = dma.hbm_to_vmem [thread:$0]  %s38_s10, 512, %s40_s13, [#allocation6], %s214_s11, %s214_s11, %s215_s12  }
   0xa   :  { %209 = dma.done.wait [#allocation4], 256  }
   0xb   :  { %210 = vsyncadd [#allocation4], 4294967040 }
   0xc   :  { %211 = dma.done.wait [#allocation6], 512  }
   0xd   :  { %212 = vsyncadd [#allocation6], 4294966784  ;;  %vm71_vm0 = vcmask 1045504   ;;  %v62_v1 = vld [vmem:[#allocation3 + $0x8] sm:$0x3f]  ;;  %v61_v2 = vld [vmem:[#allocation3] sm:$0xff] }
   0xe   :  { %150 = vmatpush.msk.msra.mxu0 %vm71_vm0, %v62_v1  ;;  %v60_v3 = vld [vmem:[%s281_s0] sm:$0xff]  ;;  %vm67_vm1 = vcmask 113664   ;;  %v99_v4 = vld [vmem:[#allocation5 + $0x18] sm:$0xff]  ;;  %v96_v7 = vld [vmem:[#allocation5] sm:$0xff]  ;;  %vm104_vm2 = vcmask 261120   ;;  %vm142_vm3 = vcmask 7168  }
   0xf   :  { %120 = vmatpush.msra.mxu1 %v99_v4  ;;  %v98_v5 = vld [vmem:[#allocation5 + $0x10] sm:$0xff]  ;;  %v97_v6 = vld [vmem:[#allocation5 + $0x8] sm:$0xff] }
  0x10   :  { %90 = vmatpush.msra.mxu0 %v61_v2  ;;  %v157_v8 = vld [vmem:[%s283_s2] ss:$0 sm:$0xff] }
  0x11   :  { %151 = vmatmul.msk.f32.vlgmr.msra.gmra.mxu0 %vm67_vm1, %v60_v3  ;;  %121 = vmatpush.msra.mxu1 %v98_v5  ;;  %v158_v12 = vld [vmem:[%s285_s4] ss:$0 sm:$0xff] }
  0x12   :  { %v159_v15 = vld [vmem:[%s286_s5] ss:$0 sm:$0xff] }
  0x13   :  { %122 = vmatpush.msra.mxu1 %v97_v6  ;;  %v160_v19 = vld [vmem:[#allocation2] ss:$0 sm:$0xff] }
  0x15   :  { %123 = vmatpush.msra.mxu1 %v96_v7 }
  0x8e   :  { %v92_v9 = vpop.f32.mrf.mxu0 }
  0x8f   :  { %v93_v10 = vadd.f32 %v157_v8, %v92_v9 }
  0x91   :  { %v95_v11 = vmax.f32 %v93_v10, 0.0 }
  0x93   :  { %152 = vmatmul.msk.f32.vlgmr.msra.gmra.mxu1 %vm104_vm2, %v95_v11 }
 0x110   :  { %v125_v13 = vpop.f32.mrf.mxu1 }
 0x111   :  { %v126_v14 = vadd.f32 %v158_v12, %v125_v13 }
 0x113   :  { %v128_v16 = vmax.f32 %v126_v14, 0.0 }
 0x115   :  { %v133_v17 = vmul.f32 %v159_v15, %v128_v16 }
 0x117   :  { %v134_v18 = vsel %vm104_vm2, %v133_v17, 0.0 }
 0x118   :  { %135 = vadd.xlane.f32.xlu0 %v134_v18 }
 0x18b   :  { %v136_v20 = vpop.xlane.xlu0 %135 }
 0x18c   :  { %v141_v21 = vadd.f32 %v160_v19, %v136_v20 }
 0x18e   :  { %143 = vst.msk [vmem:[%s288_s7] sm:$0xff] %vm142_vm3, %v141_v21 }
 0x18f   :  { %148 = vsyncpa [#allocation4], 1 }
 0x190   :  { %149 = vsyncpa [#allocation6], 1 }

</bundles_post_ra>
